<compile_context>
chip_gen: v5e
topology: v5e:2x2
jax: 0.10.0
libtpu: 0.0.40
codegen_flags: <defaults>
</compile_context>

<pallas_src>
import functools

import jax
import jax.numpy as jnp
from jax.experimental import pallas as pl
from jax.experimental.pallas import tpu as pltpu

_LANE = 128
_VMEM_LIMIT = 32 * 1024 * 1024         # explicit scoped VMEM; safe on v5e/v6e/v7x
_FUSED_VMEM_BUDGET = 24 * 1024 * 1024  # leave headroom below the 32 MiB limit


def _sn3d_fused_kernel(gates_ref, gamma_ref, beta_ref, x_ref, o_ref, *,
                       eps, count_s):
    # gates_ref : SMEM (4,)  = [mw0, mw1, vw0, vw1]  (softmax already applied)
    # gamma_ref : SMEM (C,)  per-channel affine scale
    # beta_ref  : SMEM (C,)  per-channel affine shift
    # x_ref     : VMEM (N, Sr, 128)  one channel slab (channel dim squeezed)
    # o_ref     : VMEM (N, Sr, 128)
    c = pl.program_id(0)
    x = x_ref[...].astype(jnp.float32)
    n = x.shape[0]

    inv_s = 1.0 / count_s
    inv_ns = 1.0 / (n * count_s)

    # Per-sample ("ln") sums over (zero-padded) spatial dims: lane reduce
    # first (XLU), then sublane reduce.  Padding contributes zeros; the true
    # count S is used for the mean/variance below.
    row = jnp.sum(x, axis=2, keepdims=True)                  # (N, Sr, 1)
    row_sq = jnp.sum(x * x, axis=2, keepdims=True)           # (N, Sr, 1)
    sum_ln = jnp.sum(row, axis=1, keepdims=True)             # (N, 1, 1)
    sumsq_ln = jnp.sum(row_sq, axis=1, keepdims=True)        # (N, 1, 1)
    mean_ln = sum_ln * inv_s
    var_ln = sumsq_ln * inv_s - mean_ln * mean_ln            # biased

    # Per-channel ("in") stats: fold the per-sample sums over the batch.
    mean_in = jnp.sum(sum_ln, axis=0, keepdims=True) * inv_ns        # (1, 1, 1)
    var_in = jnp.sum(sumsq_ln, axis=0, keepdims=True) * inv_ns - mean_in * mean_in

    mw0, mw1 = gates_ref[0], gates_ref[1]
    vw0, vw1 = gates_ref[2], gates_ref[3]
    mean = mw0 * mean_in + mw1 * mean_ln                     # (N, 1, 1)
    var = vw0 * var_in + vw1 * var_ln
    var = jnp.maximum(var, 0.0)                              # guard cancellation

    inv = jax.lax.rsqrt(var + eps)                           # EUP on tiny stats
    scale = gamma_ref[c] * inv                               # (N, 1, 1)
    shift = beta_ref[c] - mean * scale
    o_ref[...] = (x * scale + shift).astype(o_ref.dtype)     # single fused VPU pass


def _sn3d_normalize_kernel(scale_ref, shift_ref, x_ref, o_ref):
    # scale_ref/shift_ref : SMEM (N*C,) fused per-(n, c) scale / shift
    # x_ref/o_ref         : VMEM (sb, 128) spatial tile of one (n, c) slab
    n = pl.program_id(0)
    c = pl.program_id(1)
    idx = n * pl.num_programs(1) + c
    x = x_ref[...].astype(jnp.float32)
    o_ref[...] = (x * scale_ref[idx] + shift_ref[idx]).astype(o_ref.dtype)


def switch_norm_3d(x, mean_weight, var_weight, weight, bias, eps=1e-5,
                   force_two_pass=False):
    """SwitchNorm3d forward.  x: (N, C, D, H, W), PyTorch NCDHW convention."""
    N, C, D, H, W = x.shape
    S = D * H * W
    Sr = pl.cdiv(S, _LANE)
    S_pad = Sr * _LANE

    x3 = x.reshape(N, C, S)
    if S_pad != S:
        x3 = jnp.pad(x3, ((0, 0), (0, 0), (0, S_pad - S)))
    x4 = x3.reshape(N, C, Sr, _LANE)

    gamma = weight.reshape(C).astype(jnp.float32)
    beta = bias.reshape(C).astype(jnp.float32)
    mw = jax.nn.softmax(mean_weight.astype(jnp.float32))
    vw = jax.nn.softmax(var_weight.astype(jnp.float32))

    # VMEM estimate for one fused grid step: double-buffered in + out slabs
    # plus f32 working copies inside the body.
    blk_io = N * S_pad * x.dtype.itemsize
    est_vmem = 4 * blk_io + 3 * N * S_pad * 4
    use_fused = (not force_two_pass) and est_vmem <= _FUSED_VMEM_BUDGET

    if use_fused:
        gates = jnp.concatenate([mw, vw]).astype(jnp.float32)       # (4,)
        kernel = functools.partial(_sn3d_fused_kernel, eps=float(eps), count_s=S)
        out4 = pl.pallas_call(
            kernel,
            out_shape=jax.ShapeDtypeStruct((N, C, Sr, _LANE), x.dtype),
            grid=(C,),
            in_specs=[
                pl.BlockSpec(memory_space=pltpu.MemorySpace.SMEM),  # gates
                pl.BlockSpec(memory_space=pltpu.MemorySpace.SMEM),  # gamma
                pl.BlockSpec(memory_space=pltpu.MemorySpace.SMEM),  # beta
                pl.BlockSpec((N, None, Sr, _LANE),
                             lambda c: (0, c, 0, 0)),               # x slab
            ],
            out_specs=pl.BlockSpec((N, None, Sr, _LANE),
                                   lambda c: (0, c, 0, 0)),
            compiler_params=pltpu.CompilerParams(
                dimension_semantics=("parallel",),
                vmem_limit_bytes=_VMEM_LIMIT,
            ),
        )(gates, gamma, beta, x4)
    else:
        # Pass 1: per-(N, C) sum / sum-of-squares (plain-JAX reduction is
        # already bandwidth-optimal: 1 HBM read; zero padding contributes
        # nothing, true count S used below).
        sum_nc = jnp.sum(x3, axis=2, dtype=jnp.float32)             # (N, C)
        sumsq_nc = jnp.sum(jnp.square(x3.astype(jnp.float32)), axis=2)
        mean_ln = sum_nc / S
        var_ln = sumsq_nc / S - mean_ln * mean_ln
        mean_in = jnp.sum(sum_nc, axis=0) / (N * S)                 # (C,)
        var_in = jnp.sum(sumsq_nc, axis=0) / (N * S) - mean_in * mean_in

        mean = mw[0] * mean_in[None, :] + mw[1] * mean_ln           # (N, C)
        var = jnp.maximum(vw[0] * var_in[None, :] + vw[1] * var_ln, 0.0)
        inv = jax.lax.rsqrt(var + eps)
        scale = gamma[None, :] * inv                                # (N, C)
        shift = beta[None, :] - mean * scale

        # Pass 2: fully parallel tiled normalize, ~1 MiB f32 per tile max.
        sb = min(Sr, 2048)
        out4 = pl.pallas_call(
            _sn3d_normalize_kernel,
            out_shape=jax.ShapeDtypeStruct((N, C, Sr, _LANE), x.dtype),
            grid=(N, C, pl.cdiv(Sr, sb)),
            in_specs=[
                pl.BlockSpec(memory_space=pltpu.MemorySpace.SMEM),  # scale
                pl.BlockSpec(memory_space=pltpu.MemorySpace.SMEM),  # shift
                pl.BlockSpec((None, None, sb, _LANE),
                             lambda n, c, s: (n, c, s, 0)),
            ],
            out_specs=pl.BlockSpec((None, None, sb, _LANE),
                                   lambda n, c, s: (n, c, s, 0)),
            compiler_params=pltpu.CompilerParams(
                dimension_semantics=("parallel", "parallel", "parallel"),
                vmem_limit_bytes=_VMEM_LIMIT,
            ),
        )(scale.reshape(-1).astype(jnp.float32),
          shift.reshape(-1).astype(jnp.float32),
          x4)

    out = out4.reshape(N, C, S_pad)
    if S_pad != S:
        out = out[:, :, :S]
    return out.reshape(N, C, D, H, W)


def switch_norm_3d_ref(x, mean_weight, var_weight, weight, bias, eps=1e-5):
    """Pure-JAX reference mirroring the PyTorch forward exactly."""
    mean_in = jnp.mean(x, axis=(0, 2, 3, 4), keepdims=True)
    var_in = jnp.var(x, axis=(0, 2, 3, 4), keepdims=True)            # biased
    mean_ln = jnp.mean(x, axis=(2, 3, 4), keepdims=True)
    var_ln = jnp.var(x, axis=(2, 3, 4), keepdims=True)               # biased
    mw = jax.nn.softmax(mean_weight)
    vw = jax.nn.softmax(var_weight)
    mean = mw[0] * mean_in + mw[1] * mean_ln
    var = vw[0] * var_in + vw[1] * var_ln
    y = (x - mean) / jnp.sqrt(var + eps)
    return y * weight + bias


if __name__ == "__main__":
    num_features = 4
    N, C, D, H, W = 2, num_features, 8, 8, 8

    key = jax.random.PRNGKey(0)
    kx, kmw, kvw, kw, kb, kx2 = jax.random.split(key, 6)

    x = jax.random.normal(kx, (N, C, D, H, W), dtype=jnp.float32)
    mean_weight = jnp.ones((2,), jnp.float32) + 0.1 * jax.random.normal(kmw, (2,))
    var_weight = jnp.ones((2,), jnp.float32) + 0.1 * jax.random.normal(kvw, (2,))
    weight = jnp.ones((1, C, 1, 1, 1), jnp.float32) + 0.1 * jax.random.normal(
        kw, (1, C, 1, 1, 1))
    bias = jnp.zeros((1, C, 1, 1, 1), jnp.float32) + 0.1 * jax.random.normal(
        kb, (1, C, 1, 1, 1))

    ref = switch_norm_3d_ref(x, mean_weight, var_weight, weight, bias)

    # Fast fused single-pass path (channel-tiled grid).
    out = jax.block_until_ready(
        switch_norm_3d(x, mean_weight, var_weight, weight, bias))
    assert out.shape == (N, C, D, H, W)
    assert jnp.allclose(out, ref, atol=1e-4, rtol=1e-4), (
        float(jnp.max(jnp.abs(out - ref))))

    # Two-pass fallback path (forced) — same semantics.
    out2 = jax.block_until_ready(
        switch_norm_3d(x, mean_weight, var_weight, weight, bias,
                       force_two_pass=True))
    assert jnp.allclose(out2, ref, atol=1e-4, rtol=1e-4), (
        float(jnp.max(jnp.abs(out2 - ref))))

    # Non-multiple-of-128 spatial volume exercises the lane-padding logic.
    x_odd = jax.random.normal(kx2, (N, C, 3, 5, 7), dtype=jnp.float32)
    ref_odd = switch_norm_3d_ref(x_odd, mean_weight, var_weight, weight, bias)
    out_odd = jax.block_until_ready(
        switch_norm_3d(x_odd, mean_weight, var_weight, weight, bias))
    assert jnp.allclose(out_odd, ref_odd, atol=1e-4, rtol=1e-4), (
        float(jnp.max(jnp.abs(out_odd - ref_odd))))

    print("KERNEL_OK")
</pallas_src>

<mosaic_0001>
module attributes {stable_mosaic.version = 11 : i64} {
  func.func @_sn3d_fused_kernel(%arg0: i32, %arg1: memref<4xf32, #tpu.memory_space<smem>>, %arg2: memref<4xf32, #tpu.memory_space<smem>>, %arg3: memref<4xf32, #tpu.memory_space<smem>>, %arg4: memref<2x1x4x128xf32, #tpu.memory_space<vmem>>, %arg5: memref<2x1x4x128xf32, #tpu.memory_space<vmem>>) attributes {dimension_semantics = [#tpu.dimension_semantics<parallel>], iteration_bounds = array<i64: 4>, scalar_prefetch = 0 : i64, scratch_operands = 0 : i64, tpu.core_type = #tpu.core_type<tc>, window_params = [{transform_indices = @transform_0, window_bounds = array<i64: 4>}, {transform_indices = @transform_1, window_bounds = array<i64: 4>}, {transform_indices = @transform_2, window_bounds = array<i64: 4>}, {transform_indices = @transform_3, window_bounds = array<i64: 2, 1, 4, 128>}, {transform_indices = @transform_4, window_bounds = array<i64: 2, 1, 4, 128>}]} {
    %c0 = arith.constant 0 : index
    %c0_0 = arith.constant 0 : index
    %c0_1 = arith.constant 0 : index
    %c0_2 = arith.constant 0 : index
    %0 = vector.load %arg4[%c0, %c0_0, %c0_1, %c0_2] : memref<2x1x4x128xf32, #tpu.memory_space<vmem>>, vector<2x1x4x128xf32>
    %1 = vector.shape_cast %0 : vector<2x1x4x128xf32> to vector<2x4x128xf32>
    %cst = arith.constant dense<0.000000e+00> : vector<2x4xf32>
    %2 = vector.multi_reduction <add>, %1, %cst [2] : vector<2x4x128xf32> to vector<2x4xf32>
    %3 = vector.shape_cast %2 : vector<2x4xf32> to vector<2x4x1xf32>
    %4 = arith.mulf %1, %1 : vector<2x4x128xf32>
    %cst_3 = arith.constant dense<0.000000e+00> : vector<2x4xf32>
    %5 = vector.multi_reduction <add>, %4, %cst_3 [2] : vector<2x4x128xf32> to vector<2x4xf32>
    %6 = vector.shape_cast %5 : vector<2x4xf32> to vector<2x4x1xf32>
    %cst_4 = arith.constant dense<0.000000e+00> : vector<2x1xf32>
    %7 = vector.multi_reduction <add>, %3, %cst_4 [1] : vector<2x4x1xf32> to vector<2x1xf32>
    %8 = vector.shape_cast %7 : vector<2x1xf32> to vector<2x1x1xf32>
    %cst_5 = arith.constant dense<0.000000e+00> : vector<2x1xf32>
    %9 = vector.multi_reduction <add>, %6, %cst_5 [1] : vector<2x4x1xf32> to vector<2x1xf32>
    %10 = vector.shape_cast %9 : vector<2x1xf32> to vector<2x1x1xf32>
    %cst_6 = arith.constant 0.001953125 : f32
    %11 = vector.broadcast %cst_6 : f32 to vector<2x1x1xf32>
    %12 = arith.mulf %8, %11 : vector<2x1x1xf32>
    %cst_7 = arith.constant 0.001953125 : f32
    %13 = vector.broadcast %cst_7 : f32 to vector<2x1x1xf32>
    %14 = arith.mulf %10, %13 : vector<2x1x1xf32>
    %15 = arith.mulf %12, %12 : vector<2x1x1xf32>
    %16 = arith.subf %14, %15 : vector<2x1x1xf32>
    %cst_8 = arith.constant dense<0.000000e+00> : vector<1x1xf32>
    %17 = vector.multi_reduction <add>, %8, %cst_8 [0] : vector<2x1x1xf32> to vector<1x1xf32>
    %18 = vector.shape_cast %17 : vector<1x1xf32> to vector<1x1x1xf32>
    %cst_9 = arith.constant 9.765625E-4 : f32
    %19 = vector.broadcast %cst_9 : f32 to vector<1x1x1xf32>
    %20 = arith.mulf %18, %19 : vector<1x1x1xf32>
    %cst_10 = arith.constant dense<0.000000e+00> : vector<1x1xf32>
    %21 = vector.multi_reduction <add>, %10, %cst_10 [0] : vector<2x1x1xf32> to vector<1x1xf32>
    %22 = vector.shape_cast %21 : vector<1x1xf32> to vector<1x1x1xf32>
    %cst_11 = arith.constant 9.765625E-4 : f32
    %23 = vector.broadcast %cst_11 : f32 to vector<1x1x1xf32>
    %24 = arith.mulf %22, %23 : vector<1x1x1xf32>
    %25 = arith.mulf %20, %20 : vector<1x1x1xf32>
    %26 = arith.subf %24, %25 : vector<1x1x1xf32>
    %c0_12 = arith.constant 0 : index
    %27 = memref.load %arg1[%c0_12] : memref<4xf32, #tpu.memory_space<smem>>
    %c1 = arith.constant 1 : index
    %28 = memref.load %arg1[%c1] : memref<4xf32, #tpu.memory_space<smem>>
    %c2 = arith.constant 2 : index
    %29 = memref.load %arg1[%c2] : memref<4xf32, #tpu.memory_space<smem>>
    %c3 = arith.constant 3 : index
    %30 = memref.load %arg1[%c3] : memref<4xf32, #tpu.memory_space<smem>>
    %31 = vector.broadcast %27 : f32 to vector<1x1x1xf32>
    %32 = arith.mulf %31, %20 : vector<1x1x1xf32>
    %33 = vector.broadcast %28 : f32 to vector<2x1x1xf32>
    %34 = arith.mulf %33, %12 : vector<2x1x1xf32>
    %35 = vector.broadcast %32 : vector<1x1x1xf32> to vector<2x1x1xf32>
    %36 = arith.addf %35, %34 : vector<2x1x1xf32>
    %37 = vector.broadcast %29 : f32 to vector<1x1x1xf32>
    %38 = arith.mulf %37, %26 : vector<1x1x1xf32>
    %39 = vector.broadcast %30 : f32 to vector<2x1x1xf32>
    %40 = arith.mulf %39, %16 : vector<2x1x1xf32>
    %41 = vector.broadcast %38 : vector<1x1x1xf32> to vector<2x1x1xf32>
    %42 = arith.addf %41, %40 : vector<2x1x1xf32>
    %cst_13 = arith.constant 0.000000e+00 : f32
    %43 = vector.broadcast %cst_13 : f32 to vector<2x1x1xf32>
    %44 = arith.maximumf %42, %43 : vector<2x1x1xf32>
    %cst_14 = arith.constant 9.99999974E-6 : f32
    %45 = vector.broadcast %cst_14 : f32 to vector<2x1x1xf32>
    %46 = arith.addf %44, %45 : vector<2x1x1xf32>
    %47 = math.rsqrt %46 : vector<2x1x1xf32>
    %48 = arith.index_cast %arg0 : i32 to index
    %49 = memref.load %arg2[%48] : memref<4xf32, #tpu.memory_space<smem>>
    %50 = vector.broadcast %49 : f32 to vector<2x1x1xf32>
    %51 = arith.mulf %50, %47 : vector<2x1x1xf32>
    %52 = arith.index_cast %arg0 : i32 to index
    %53 = memref.load %arg3[%52] : memref<4xf32, #tpu.memory_space<smem>>
    %54 = arith.mulf %36, %51 : vector<2x1x1xf32>
    %55 = vector.broadcast %53 : f32 to vector<2x1x1xf32>
    %56 = arith.subf %55, %54 : vector<2x1x1xf32>
    %57 = vector.broadcast %51 : vector<2x1x1xf32> to vector<2x4x128xf32>
    %58 = arith.mulf %1, %57 : vector<2x4x128xf32>
    %59 = vector.broadcast %56 : vector<2x1x1xf32> to vector<2x4x128xf32>
    %60 = arith.addf %58, %59 : vector<2x4x128xf32>
    %c0_15 = arith.constant 0 : index
    %c0_16 = arith.constant 0 : index
    %c0_17 = arith.constant 0 : index
    %c0_18 = arith.constant 0 : index
    %61 = vector.load %arg5[%c0_15, %c0_16, %c0_17, %c0_18] : memref<2x1x4x128xf32, #tpu.memory_space<vmem>>, vector<2x1x4x128xf32>
    %62 = vector.shape_cast %61 : vector<2x1x4x128xf32> to vector<2x4x128xf32>
    %63 = vector.shape_cast %60 : vector<2x4x128xf32> to vector<2x1x4x128xf32>
    tpu.vector_store %arg5[%c0_15, %c0_16, %c0_17, %c0_18], %63 {strides = array<i32>} : memref<2x1x4x128xf32, #tpu.memory_space<vmem>>, vector<2x1x4x128xf32>,
    return
  }
  func.func @transform_0(%arg0: i32) -> i32 {
    %c0_i32 = arith.constant 0 : i32
    %c0_i32_0 = arith.constant 0 : i32
    return %c0_i32 : i32
  }
  func.func @transform_1(%arg0: i32) -> i32 {
    %c0_i32 = arith.constant 0 : i32
    %c0_i32_0 = arith.constant 0 : i32
    return %c0_i32 : i32
  }
  func.func @transform_2(%arg0: i32) -> i32 {
    %c0_i32 = arith.constant 0 : i32
    %c0_i32_0 = arith.constant 0 : i32
    return %c0_i32 : i32
  }
  func.func @transform_3(%arg0: i32) -> (i32, i32, i32, i32) {
    %c0_i32 = arith.constant 0 : i32
    %c0_i32_0 = arith.constant 0 : i32
    %c0_i32_1 = arith.constant 0 : i32
    %c0_i32_2 = arith.constant 0 : i32
    return %c0_i32, %arg0, %c0_i32_0, %c0_i32_1 : i32, i32, i32, i32
  }
  func.func @transform_4(%arg0: i32) -> (i32, i32, i32, i32) {
    %c0_i32 = arith.constant 0 : i32
    %c0_i32_0 = arith.constant 0 : i32
    %c0_i32_1 = arith.constant 0 : i32
    %c0_i32_2 = arith.constant 0 : i32
    return %c0_i32, %arg0, %c0_i32_0, %c0_i32_1 : i32, i32, i32, i32
  }
}

</mosaic_0001>

<bundles_post_ra>
// kernel: tpu_custom_call.1
= control target key start
LH: loop header
LB: loop body
LE: loop exit
PB: predicated region body
PF: predicated region fallthrough
CT: control target
= control target key end

     0   :  { %s979_s0 = inlined_call_operand.hbm [shape: f32[4], index: 0, kind: input, shape index: {}]   ;;  %s980_s1 = inlined_call_operand.hbm [shape: f32[4], index: 1, kind: input, shape index: {}]   ;;  %s981_s2 = inlined_call_operand.vmem [shape: f32[4], index: 2, kind: input, shape index: {}]   ;;  %s982_s3 = inlined_call_operand.hbm [shape: f32[2,4,4,128], index: 3, kind: input, shape index: {}]   ;;  %s983_s4 = inlined_call_operand.hbm [shape: f32[2,4,4,128], index: 4, kind: output, shape index: {}]  }
   0x1   :  { %984 = sst [smem:[#allocation17_spill]] %s979_s0 }
   0x2   :  { %985 = sst [smem:[#allocation18_spill]] %s980_s1 }
   0x3   :  { %9 = vsyncpa [#allocation5], 0 }
   0x4   :  { %10 = vsyncpa [#allocation8], 0 }
   0x5   :  { %11 = vsyncpa [#allocation6], 0 }
   0x6   :  { %12 = vsyncpa [#allocation3], 0 }
   0x7   :  { %14 = vsyncpa [#allocation3 + $0x1], 0 }
   0x8   :  { %15 = vsyncpa [#allocation4], 0 }
   0x9   :  { %17 = vsyncpa [#allocation4 + $0x1], 0  ;;  %s793_s15 = smov 0   ;;  %s795_s16 = smov 0  }
   0xa   :  { %s797_s17 = smov 0   ;;  %s799_s18 = smov 0  }
   0xb LB: > { %s814_s19 = sadd.s32 4294967295, %s757_s18   ;;  %s496_s20 = sadd.s32 4294967294, %s757_s18   ;;  %s757_s18 = sphi %s799_s18, %s997_s18   ;;  %s753_s17 = sphi %s797_s17, %s996_s17   ;;  %s749_s16 = sphi %s795_s16, %s995_s16   ;;  %s745_s15 = sphi %s793_s15, %s994_s15  }
   0xc   : > { %s818_s21 = sadd.s32 1, %s757_s18   ;;  %s93_s22 = sadd.s32 1, %s753_s17 }
   0xd   : > { %s90_s23 = ssub.s32 %s757_s18, %s818_s21  ;;  %p100_p0 = scmp.ne.s32.totalorder %s753_s17, %s749_s16 }
   0xe   : > { %p91_p1 = scmp.eq.s32.totalorder %s90_s23, 0  ;;  %p101_p2 = scmp.eq.s32.totalorder %s757_s18, 0 }
   0xf   : > { %p106_p3 = scmp.ne.s32.totalorder %s749_s16, %s745_s15  ;;  %p107_p4 = scmp.eq.s32.totalorder %s814_s19, 0 }
  0x10   : > { %s830_s24 = scalar_select %p91_p1, %s753_s17, %s93_s22  }
  0x11   : > { %p832_p5 = por %p101_p2, %p100_p0  ;;  %p838_p6 = por %p107_p4, %p106_p3 }
  0x12   : > { %p130_p7 = scmp.eq.s32.totalorder %s814_s19, 3  ;;  %p136_p8 = scmp.eq.s32.totalorder %s496_s20, 3 }
  0x13   : > { %p497_p9 = scmp.ge.s32.totalorder %s757_s18, 1  ;;  %p143_p10 = scmp.lt.s32.totalorder %s757_s18, 5 }
  0x14   : > { %p845_p11 = por %p130_p7, %p100_p0  ;;  %p849_p12 = por %p136_p8, %p106_p3 }
  0x15   : > { %p853_p13 = pnand %p497_p9, %p143_p10  ;;  %s991_s0 = sld [smem:[#allocation17_spill]] }
  0x16   : > { %p554_p0 = scmp.lt.s32.totalorder %s757_s18, 4  ;;  %s992_s1 = sld [smem:[#allocation18_spill]] }
  0x17   : > { %p533_p1 = pneg %p853_p13  ;;  %s759_s11 = smov [#allocation2]  }
  0x18   : > { %p870_p3 = pnand %p554_p0, %p832_p5  ;;  %s175_s14 = sshll.u32 %s981_s2, 4  ;;  %s176_s14 = int_to_ptr.vmem [resolvable:$true] %s175_s14 }
  0x19   : > { %p534_p2 = pnand %p533_p1, %p107_p4  ;;  %s760_s20 = smov [#allocation7]  }
  0x1a   : > { %s761_s22 = smov [#allocation9]   ;;  %s186_s23 = sand.u32 1, %s753_s17  }
  0x1b   : > { %s155_s6 = sshll.u32 %s991_s0, 4  ;;  %s503_s30 = sshll.u32 %s757_s18, 2  ;;  %s156_s6 = int_to_ptr.hbm [resolvable:$true] %s155_s6 }
  0x1c   : > { %s165_s9 = sshll.u32 %s992_s1, 4  ;;  %s502_s25 = sshll.u32 %s186_s23, 3  ;;  %s166_s9 = int_to_ptr.hbm [resolvable:$true] %s165_s9 }
  0x1d   : > { %536 = dma.hbm_to_smem (!%p534_p2), %s156_s6, 16, %s759_s11, [#allocation5]  }
  0x1e   : > { %539 = dma.hbm_to_smem (!%p534_p2), %s166_s9, 16, %s760_s20, [#allocation8]  }
  0x1f   : > { %542 = dma.vmem_to_smem (!%p534_p2), %s176_s14, 16, %s761_s22, [#allocation6]  }
  0x20   : > { %s194_s8 = scalar_lea.hbm %s982_s3, %s503_s30  ;;  %s190_s1 = scalar_lea.vmem [#allocation10], %s502_s25 }
  0x21   : > { %s195_s0 = sshll.u32 %s194_s8, 4  ;;  %s197_s6 = sshll.u32 %s190_s1, 4  ;;  %s196_s0 = int_to_ptr.hbm [resolvable:$true] %s195_s0  ;;  %s198_s6 = int_to_ptr.vmem [resolvable:$true] %s197_s6 }
  0x22   : > { %s187_s11 = scalar_lea.sflag [#allocation3], %s186_s23  ;;  %s649_s12 = sshra.s32 %s196_s0, 4  ;;  %s650_s12 = int_to_ptr.hbm [resolvable:$true] %s649_s12 }
  0x23   : > { %s651_s9 = scalar_lea.hbm %s650_s12, 8  ;;  %p653_p7 = pneg %p870_p3 }
  0x24   : > { %p652_p5 = scmp.ne.s32.totalorder %s650_s12, %s651_s9  ;;  %s656_s20 = scalar_lea.hbm %s982_s3, 32 }
  0x25   : > { %p657_p10 = scmp.lt.s32.totalorder %s650_s12, %s982_s3  ;;  %p658_p1 = scmp.lt.s32.totalorder %s656_s20, %s651_s9 }
  0x26   : > { %p654_p8 = pnand %p653_p7, %p652_p5 }
  0x27   : > { %p659_p0 = por %p658_p1, %p657_p10 }
  0x28   : > { %p655_p9 = pneg %p654_p8 }
  0x2a   : > { %p660_p2 = pnand %p659_p0, %p655_p9 }
  0x2c   : > { %663 = shalt.err (!%p660_p2)
}
  0x2d   : > { %s762_s1 = smov 256   ;;  %s763_s23 = smov 64  }
  0x2e   : > { %s764_s25 = smov 4   ;;  %209 = sbr.rel (%p853_p13) target bundleno = 249 (0xf9), region = 36 }
  0x2f   : > { %546 = dma.hbm_to_vmem [thread:$0]  (!%p870_p3), %s196_s0, 128, %s198_s6, %s187_s11, %s762_s1, %s763_s23, %s764_s25  }
  0x33   : > { %724 = dma.done.wait (%p107_p4), [#allocation5], 16  }
  0x34   : > { %726 = vsyncadd (%p107_p4), [#allocation5], 4294967280 }
  0x35   : > { %728 = dma.done.wait (%p107_p4), [#allocation8], 16  }
  0x36   : > { %730 = vsyncadd (%p107_p4), [#allocation8], 4294967280 }
  0x37   : > { %732 = dma.done.wait (%p107_p4), [#allocation6], 16  }
  0x38   : > { %734 = vsyncadd (%p107_p4), [#allocation6], 4294967280  ;;  %s907_s0 = sand.u32 1, %s749_s16  }
  0x39   : > { %s508_s29 = sshll.u32 %s907_s0, 3  ;;  %s227_s10 = scalar_lea.sflag [#allocation3], %s907_s0 }
  0x3a   : > { %s230_s5 = scalar_lea.vmem [#allocation10], %s508_s29 }
  0x3b   : > { %736 = dma.done.wait (%p838_p6), %s227_s10, 128  }
  0x3c   : > { %738 = vsyncadd (%p838_p6), %s227_s10, 4294967168 }
  0x3d   : > { %236 = sfence }
  0x3e   : > { %v917_v0 = vld [vmem:[%s230_s5] sm:$0xf]  ;;  %vm259_vm0 = vcmask 1043456   ;;  %v923_v3 = vld [vmem:[%s230_s5 + $0x4] sm:$0xf]  ;;  %s512_s26 = sld [smem:[#allocation2 + $0x3]] }
  0x3f   : > { %v260_v1 = vsel %vm259_vm0, %v917_v0, 0.0  ;;  %v266_v2 = vmul.f32 %v917_v0, %v917_v0  ;;  %v267_v5 = vmul.f32 %v923_v3, %v923_v3  ;;  %v263_v6 = vsel %vm259_vm0, %v923_v3, 0.0  ;;  %s511_s7 = sld [smem:[#allocation2 + $0x2]]  ;;  %s514_s9 = sshll.u32 %s814_s19, 2 }
  0x40   : > { %261 = vadd.xlane.f32.xlu0 %v260_v1  ;;  %s316_s8 = sld [smem:[#allocation2]]  ;;  %s385_s20 = scalar_lea.hbm %s983_s4, %s514_s9 }
  0x41   : > { %v268_v4 = vsel %vm259_vm0, %v266_v2, 0.0  ;;  %v271_v7 = vsel %vm259_vm0, %v267_v5, 0.0  ;;  %s510_s6 = sld [smem:[#allocation2 + $0x1]]  ;;  %s388_s30 = sshll.u32 %s385_s20, 4  ;;  %s389_s30 = int_to_ptr.hbm [resolvable:$true] %s388_s30 }
  0x42   : > { %269 = vadd.xlane.f32.xlu1 %v268_v4  ;;  %s936_s11 = sld [smem:[#allocation7 + %s814_s19]]  ;;  %s375_s1 = scalar_lea.sflag [#allocation4], %s907_s0 }
  0x43   : > { %s939_s12 = sld [smem:[#allocation9 + %s814_s19]]  ;;  %s256_s19 = scalar_lea.vmem [#allocation11], %s508_s29 }
  0x44   : > { %v329_v53 = vstv %s512_s26  ;;  %s386_s22 = sshll.u32 %s256_s19, 4  ;;  %s693_s23 = sshra.s32 %s389_s30, 4  ;;  %s387_s22 = int_to_ptr.vmem [resolvable:$true] %s386_s22  ;;  %s694_s23 = int_to_ptr.hbm [resolvable:$true] %s693_s23 }
  0x45   : > { %v327_v54 = vstv %s511_s7  ;;  %s695_s25 = scalar_lea.hbm %s694_s23, 8  ;;  %s699_s5 = scalar_lea.hbm %s983_s4, 32 }
  0x46   : > { %p696_p4 = scmp.ne.s32.totalorder %s694_s23, %s695_s25  ;;  %p700_p3 = scmp.lt.s32.totalorder %s694_s23, %s983_s4 }
  0x47   : > { %p701_p5 = scmp.lt.s32.totalorder %s699_s5, %s695_s25 }
  0x48   : > { %264 = vadd.xlane.f32.xlu0 %v263_v6  ;;  %p697_p6 = pnand %p696_p4, %p845_p11 }
  0x49   : > { %p702_p7 = por %p701_p5, %p700_p3 }
  0x4a   : > { %272 = vadd.xlane.f32.xlu1 %v271_v7  ;;  %p698_p13 = pneg %p697_p6 }
  0x4c   : > { %p703_p8 = pnand %p702_p7, %p698_p13 }
  0xb3   : > { %v262_v8 = vpop.xlane.xlu0 %261 }
  0xb4   : > { %v274_v9 = vsel %vm259_vm0, %v262_v8, 0.0 }
  0xb5   : > { %v275_v10 = vrot.slane %v274_v9, 4  ;;  %v270_v11 = vpop.xlane.xlu1 %269 }
  0xb6   : > { %v288_v12 = vsel %vm259_vm0, %v270_v11, 0.0 }
  0xb7   : > { %v276_v13 = vadd.f32 %v275_v10, %v274_v9  ;;  %v289_v14 = vrot.slane %v288_v12, 4  ;;  %v320_v9 = vstv %s316_s8 }
  0xb9   : > { %v277_v15 = vrot.slane %v276_v13, 2  ;;  %v290_v16 = vadd.f32 %v289_v14, %v288_v12  ;;  %v322_v12 = vstv %s510_s6 }
  0xbb   : > { %v278_v17 = vadd.f32 %v277_v15, %v276_v13  ;;  %v291_v18 = vrot.slane %v290_v16, 2  ;;  %v265_v19 = vpop.xlane.xlu0 %264 }
  0xbc   : > { %v281_v20 = vsel %vm259_vm0, %v265_v19, 0.0 }
  0xbd   : > { %v282_v21 = vrot.slane %v281_v20, 4  ;;  %v273_v22 = vpop.xlane.xlu1 %272  ;;  %v279_v23 = vrot.slane %v278_v17, 1  ;;  %v292_v24 = vadd.f32 %v291_v18, %v290_v16 }
  0xbe   : > { %v295_v25 = vsel %vm259_vm0, %v273_v22, 0.0 }
  0xbf   : > { %v283_v26 = vadd.f32 %v282_v21, %v281_v20  ;;  %v296_v27 = vrot.slane %v295_v25, 4  ;;  %v280_v30 = vadd.f32 %v279_v23, %v278_v17  ;;  %v293_v31 = vrot.slane %v292_v24, 1 }
  0xc0   : > { %v359_v17 = vstv %s936_s11 }
  0xc1   : > { %v284_v28 = vrot.slane %v283_v26, 2  ;;  %v297_v29 = vadd.f32 %v296_v27, %v295_v25  ;;  %v302_v35 = vmul.f32 0.001953125, %v280_v30  ;;  %v294_v36 = vadd.f32 %v293_v31, %v292_v24 }
  0xc2   : > { %v365_v27 = vstv %s939_s12 }
  0xc3   : > { %v285_v32 = vadd.f32 %v284_v28, %v283_v26  ;;  %v298_v33 = vrot.slane %v297_v29, 2  ;;  %v306_v42 = vmul.f32 %v302_v35, %v302_v35  ;;  %v304_v43 = vmul.f32 0.001953125, %v294_v36 }
  0xc4   : > { %v323_v18 = vmul.f32 %v322_v12, %v302_v35 }
  0xc5   : > { %v286_v34 = vrot.slane %v285_v32, 1  ;;  %v299_v37 = vadd.f32 %v298_v33, %v297_v29  ;;  %v308_v50 = vsub.f32 %v304_v43, %v306_v42 }
  0xc7   : > { %v287_v38 = vadd.f32 %v286_v34, %v285_v32  ;;  %v300_v39 = vrot.slane %v299_v37, 1  ;;  %v330_v56 = vmul.f32 %v329_v53, %v308_v50 }
  0xc9   : > { %v303_v40 = vmul.f32 0.001953125, %v287_v38  ;;  %v310_v41 = vadd.f32 %v287_v38, %v280_v30  ;;  %v301_v44 = vadd.f32 %v300_v39, %v299_v37 }
  0xcb   : > { %v307_v45 = vmul.f32 %v303_v40, %v303_v40  ;;  %v311_v46 = vmul.f32 0.0009765625, %v310_v41  ;;  %v305_v47 = vmul.f32 0.001953125, %v301_v44  ;;  %v312_v48 = vadd.f32 %v301_v44, %v294_v36 }
  0xcc   : > { %v324_v20 = vmul.f32 %v322_v12, %v303_v40 }
  0xcd   : > { %v314_v49 = vmul.f32 %v311_v46, %v311_v46  ;;  %v309_v51 = vsub.f32 %v305_v47, %v307_v45  ;;  %v313_v52 = vmul.f32 0.0009765625, %v312_v48  ;;  %v321_v14 = vmul.f32 %v320_v9, %v311_v46 }
  0xcf   : > { %v315_v55 = vsub.f32 %v313_v52, %v314_v49  ;;  %v331_v58 = vmul.f32 %v329_v53, %v309_v51  ;;  %v325_v22 = vadd.f32 %v323_v18, %v321_v14  ;;  %v326_v25 = vadd.f32 %v324_v20, %v321_v14 }
  0xd1   : > { %v328_v57 = vmul.f32 %v327_v54, %v315_v55 }
  0xd3   : > { %v332_v59 = vadd.f32 %v330_v56, %v328_v57  ;;  %v333_v60 = vadd.f32 %v331_v58, %v328_v57 }
  0xd5   : > { %v334_v61 = vmax.f32 %v332_v59, 0.0  ;;  %v335_v62 = vmax.f32 %v333_v60, 0.0 }
  0xd7   : > { %v336_v63 = vadd.f32 1e-05, %v334_v61  ;;  %v337_v1 = vadd.f32 1e-05, %v335_v62 }
  0xd9   : > { %600 = vrsqrt.f32 %v336_v63  ;;  %vm344_vm3 = vweird.f32 %v336_v63  ;;  %vm354_vm5 = vweird.f32 %v337_v1 }
  0xda   : > { %602 = vrsqrt.f32 %v337_v1 }
  0xdf   : > { %v601_v2 = vpop.eup %600 }
  0xe0   : > { %v603_v4 = vpop.eup %602  ;;  %v339_v5 = vmul.f32 %v601_v2, %v336_v63  ;;  %vm345_vm1 = vweird.f32 %v601_v2 }
  0xe1   : > { %v349_v6 = vmul.f32 %v603_v4, %v337_v1  ;;  %vm355_vm2 = vweird.f32 %v603_v4  ;;  %vm346_vm4 = vmor %vm344_vm3, %vm345_vm1 }
  0xe2   : > { %v340_v7 = vmul.f32 %v601_v2, %v339_v5  ;;  %vm356_vm6 = vmor %vm354_vm5, %vm355_vm2 }
  0xe3   : > { %v350_v8 = vmul.f32 %v603_v4, %v349_v6 }
  0xe4   : > { %v341_v10 = vmul.f32 0.5, %v340_v7 }
  0xe5   : > { %v351_v11 = vmul.f32 0.5, %v350_v8 }
  0xe6   : > { %v342_v13 = vsub.f32 1.5, %v341_v10 }
  0xe7   : > { %v352_v15 = vsub.f32 1.5, %v351_v11 }
  0xe8   : > { %v343_v16 = vmul.f32 %v601_v2, %v342_v13 }
  0xe9   : > { %v353_v19 = vmul.f32 %v603_v4, %v352_v15 }
  0xea   : > { %v347_v21 = vsel %vm346_vm4, %v601_v2, %v343_v16 }
  0xeb   : > { %v357_v23 = vsel %vm356_vm6, %v603_v4, %v353_v19  ;;  %v360_v24 = vmul.f32 %v359_v17, %v347_v21 }
  0xec   : > { %v361_v26 = vmul.f32 %v359_v17, %v357_v23 }
  0xed   : > { %v363_v28 = vmul.f32 %v360_v24, %v325_v22  ;;  %v368_v31 = vmul.f32 %v360_v24, %v917_v0 }
  0xee   : > { %v364_v29 = vmul.f32 %v361_v26, %v326_v25  ;;  %v369_v33 = vmul.f32 %v361_v26, %v923_v3 }
  0xef   : > { %v366_v30 = vsub.f32 %v365_v27, %v363_v28 }
  0xf0   : > { %v367_v32 = vsub.f32 %v365_v27, %v364_v29 }
  0xf1   : > { %v370_v34 = vadd.f32 %v368_v31, %v366_v30 }
  0xf2   : > { %v371_v35 = vadd.f32 %v369_v33, %v367_v32 }
  0xf3   : > { %372 = vst [vmem:[%s256_s19] sm:$0xf] %v370_v34 }
  0xf4   : > { %373 = vst [vmem:[%s256_s19 + $0x4] sm:$0xf] %v371_v35 }
  0xf5   : > { %706 = shalt.err (!%p703_p8)
}
  0xf6   : > { %s765_s0 = smov 64   ;;  %s766_s8 = smov 256  }
  0xf7   : > { %s767_s6 = smov 4  }
  0xf8   : > { %531 = dma.vmem_to_hbm [thread:$0]  (%p845_p11), %s387_s22, 128, %s389_s30, %s375_s1, %s765_s0, %s766_s8, %s767_s6  }
  0xf9 PF: > { %p558_p9 = scmp.ge.s32.totalorder %s757_s18, 2  ;;  %s403_s11 = sand.u32 1, %s745_s15  }
  0xfa   : > { %s404_s12 = scalar_lea.sflag [#allocation4], %s403_s11 }
  0xfb   : > { %p548_p10 = pnand %p558_p9, %p849_p12 }
  0xfd   : > { %p549_p1 = pneg %p548_p10 }
  0xff   : > { %740 = dma.done.wait (%p549_p1), %s404_s12, 128  }
 0x100   : > { %742 = vsyncadd (%p549_p1), %s404_s12, 4294967168  ;;  %p20_p0 = scmp.ge.s32.totalorder %s818_s21, 6   ;;  %s994_s15 = smov %s749_s16 }
 0x101   : > { %s995_s16 = smov %s753_s17  ;;  %s996_s17 = smov %s830_s24 }
 0x102   : > { %s997_s18 = smov %s818_s21  ;;  %22 = sbr.rel (!%p20_p0) target bundleno = 11 (0xb), region = 95 }
 0x107   :  { %410 = vsyncpa [#allocation3], 1 }
 0x108   :  { %412 = vsyncpa [#allocation3 + $0x1], 1 }
 0x109   :  { %413 = vsyncpa [#allocation4], 1 }
 0x10a   :  { %415 = vsyncpa [#allocation4 + $0x1], 1 }
 0x10b   :  { %416 = vsyncpa [#allocation5], 1 }
 0x10c   :  { %418 = vsyncpa [#allocation5 + $0x1], 1 }
 0x10d   :  { %419 = vsyncpa [#allocation8], 1 }
 0x10e   :  { %420 = vsyncpa [#allocation6], 1 }
 0x10f   :  { %422 = vsyncpa [#allocation6 + $0x1], 1 }

</bundles_post_ra>
